<compile_context>
chip_gen: v6e
topology: v6e:2x2x1
jax: 0.10.0
libtpu: 0.0.40
codegen_flags: <defaults>
</compile_context>

<pallas_src>
import jax
import jax.numpy as jnp
from jax.experimental import pallas as pl
from jax.experimental.pallas import tpu as pltpu

BN_EPS = 1e-5


# ----------------------------- Pallas kernel ------------------------------- #

def _make_kernel(planes, cin, npad, padoff, nbuf, tap_offsets):
    assert cin == planes, "identity skip / scratch reuse need in_planes == planes"

    def kernel(x_ref, w1_ref, b1_ref, w2_ref, b2_ref, mask_ref, out_ref,
               stack_ref, y1_ref):
        mask = mask_ref[...]                                   # (1, npad) f32

        # Load the resident, zero-haloed input once; the bf16 copy feeds the
        # MXU, the f32 original is reused for the identity residual.
        xf = x_ref[0]                                          # (cin, nbuf) f32
        xb = xf.astype(jnp.bfloat16)

        # ---- conv1 (+bn1 folded): stage 9 shifted slices -> ONE K=9*cin dot
        # NOTE: K = 144 fits a single pass on v6e/v7x (256-deep MXU); on v5e
        # it becomes a 128 + 16 pass, still far better than nine K=16 dots.
        for t, off in enumerate(tap_offsets):
            stack_ref[t * cin:(t + 1) * cin, :] = \
                xb[:, padoff + off: padoff + off + npad]
        acc1 = jnp.dot(w1_ref[...], stack_ref[...],
                       preferred_element_type=jnp.float32)     # (planes, npad)
        # mask zeroes the spatial-pad / lane-fill positions so conv2 sees
        # proper zero padding
        y1 = jnp.maximum(acc1 + b1_ref[...], 0.0) * mask

        # Stage conv1 output in a zero-haloed bf16 VMEM buffer (never -> HBM).
        # Only the two halo stripes are zeroed; the interior is overwritten.
        y1_ref[:, 0:padoff] = jnp.zeros((planes, padoff), y1_ref.dtype)
        y1_ref[:, padoff + npad:nbuf] = jnp.zeros((planes, padoff), y1_ref.dtype)
        y1_ref[:, padoff:padoff + npad] = y1.astype(y1_ref.dtype)

        # ---- conv2 (+bn2 folded): same staging trick, ONE matmul -----------
        for t, off in enumerate(tap_offsets):
            stack_ref[t * planes:(t + 1) * planes, :] = \
                y1_ref[:, padoff + off: padoff + off + npad]
        acc2 = jnp.dot(w2_ref[...], stack_ref[...],
                       preferred_element_type=jnp.float32)     # (planes, npad)

        # ---- identity residual (f32, reused from the resident x) + ReLU ----
        residual = xf[:, padoff:padoff + npad]
        out_ref[0] = jnp.maximum(acc2 + b2_ref[...] + residual, 0.0)

    return kernel


# ------------------------------- JAX glue ---------------------------------- #

def _fold_bn(gamma, beta, mean, var, conv_bias):
    """Fold eval-mode BatchNorm (+ conv bias) into per-channel scale / shift."""
    scale = gamma / jnp.sqrt(var + BN_EPS)
    shift = beta + scale * (conv_bias - mean)
    return scale, shift


def _stack_taps(w_oihw, scale):
    """(O, I, 3, 3) * scale_o -> (O, 9*I) bf16; columns ordered (kh, kw, i)."""
    O, I, KH, KW = w_oihw.shape
    w = w_oihw.astype(jnp.float32) * scale[:, None, None, None]
    return jnp.transpose(w, (0, 2, 3, 1)).reshape(O, KH * KW * I).astype(jnp.bfloat16)


def basic_block_forward(x_nchw, p):
    """BasicBlock forward (stride=1, downsample=None, se=False). x: (B, C, H, W)."""
    B, C, H, W = x_nchw.shape
    planes = p["w1"].shape[0]
    assert p["w1"].shape[1] == C and planes == C, "identity skip needs in_planes == planes"

    Hp, Wp = H + 2, W + 2
    nflat = Hp * Wp                               # real padded-spatial positions / image
    npad = ((nflat + 127) // 128) * 128           # lane-dense per-image spatial axis
    padoff = 128                                  # halo width: >= Wp+1 and lane aligned
    nbuf = npad + 2 * padoff

    # NCHW -> (B, C, zero-haloed flattened padded spatial); tail lanes are zero.
    xp = jnp.pad(x_nchw.astype(jnp.float32), ((0, 0), (0, 0), (1, 1), (1, 1)))
    x_buf = jnp.pad(xp.reshape(B, C, nflat),
                    ((0, 0), (0, 0), (padoff, padoff + npad - nflat)))   # (B, C, nbuf)

    # Fold eval-mode BN (+ conv bias) into weights / bias at trace time.
    s1, sh1 = _fold_bn(p["g1"], p["be1"], p["m1"], p["v1"], p["b1"])
    s2, sh2 = _fold_bn(p["g2"], p["be2"], p["m2"], p["v2"], p["b2"])
    w1k = _stack_taps(p["w1"], s1)                # (planes, 9*C)      bf16
    w2k = _stack_taps(p["w2"], s2)                # (planes, 9*planes) bf16
    b1k = sh1.reshape(planes, 1).astype(jnp.float32)
    b2k = sh2.reshape(planes, 1).astype(jnp.float32)

    # Interior mask over the padded flattened spatial axis (data independent,
    # constant-folded under jit).  Zero on pad rows/cols and on the lane fill.
    hh = jnp.arange(Hp)[:, None]
    ww = jnp.arange(Wp)[None, :]
    m2d = ((hh >= 1) & (hh <= H) & (ww >= 1) & (ww <= W)).astype(jnp.float32)
    mask = jnp.pad(m2d.reshape(1, nflat), ((0, 0), (0, npad - nflat)))   # (1, npad)

    # Flat offset of conv tap (kh, kw) in the padded flattened spatial space.
    tap_offsets = tuple((kh - 1) * Wp + (kw - 1) for kh in range(3) for kw in range(3))
    kernel = _make_kernel(planes, C, npad, padoff, nbuf, tap_offsets)

    out = pl.pallas_call(
        kernel,
        out_shape=jax.ShapeDtypeStruct((B, planes, npad), jnp.float32),
        grid_spec=pltpu.PrefetchScalarGridSpec(
            num_scalar_prefetch=0,
            grid=(B,),                                            # one image / step
            in_specs=[
                pl.BlockSpec((1, C, nbuf), lambda b: (b, 0, 0)),
                pl.BlockSpec((planes, 9 * C), lambda b: (0, 0)),
                pl.BlockSpec((planes, 1), lambda b: (0, 0)),
                pl.BlockSpec((planes, 9 * planes), lambda b: (0, 0)),
                pl.BlockSpec((planes, 1), lambda b: (0, 0)),
                pl.BlockSpec((1, npad), lambda b: (0, 0)),
            ],
            out_specs=pl.BlockSpec((1, planes, npad), lambda b: (b, 0, 0)),
            scratch_shapes=[
                pltpu.VMEM((9 * C, npad), jnp.bfloat16),   # stacked shifted taps
                pltpu.VMEM((planes, nbuf), jnp.bfloat16),  # zero-haloed conv1 out
            ],
        ),
        compiler_params=pltpu.CompilerParams(
            dimension_semantics=("parallel",),            # megacore-shardable on v7x
            vmem_limit_bytes=32 * 1024 * 1024),
    )(x_buf, w1k, b1k, w2k, b2k, mask)

    # (B, planes, npad) -> interior -> (B, planes, H, W)
    out4 = out[:, :, :nflat].reshape(B, planes, Hp, Wp)[:, :, 1:H + 1, 1:W + 1]
    return out4


# ----------------------------- pure-JAX reference --------------------------- #

def reference_forward(x, p):
    def conv(x_, w, b, stride, pad):
        y = jax.lax.conv_general_dilated(
            x_, w, window_strides=(stride, stride),
            padding=[(pad, pad), (pad, pad)],
            dimension_numbers=("NCHW", "OIHW", "NCHW"),
            precision=jax.lax.Precision.HIGHEST)
        return y + b[None, :, None, None]

    def bn(x_, g, be, m, v):
        return (g[None, :, None, None] * (x_ - m[None, :, None, None])
                / jnp.sqrt(v[None, :, None, None] + BN_EPS)
                + be[None, :, None, None])

    residual = x
    out = jax.nn.relu(bn(conv(x, p["w1"], p["b1"], 1, 1),
                         p["g1"], p["be1"], p["m1"], p["v1"]))
    out = bn(conv(out, p["w2"], p["b2"], 1, 1),
             p["g2"], p["be2"], p["m2"], p["v2"])
    return jax.nn.relu(out + residual)


# ---------------------------------- main ------------------------------------ #

def make_params(key, in_planes, planes):
    ks = jax.random.split(key, 12)

    def rnd(k, shape, s=0.1):
        return (s * jax.random.normal(k, shape)).astype(jnp.float32)

    return {
        # conv weights (PyTorch OIHW) + biases (nn.Conv2d default bias=True)
        "w1": rnd(ks[0], (planes, in_planes, 3, 3)),
        "b1": rnd(ks[1], (planes,)),
        "w2": rnd(ks[2], (planes, planes, 3, 3)),
        "b2": rnd(ks[3], (planes,)),
        # BN params (eval mode: gamma, beta, running_mean, running_var)
        "g1": 1.0 + rnd(ks[4], (planes,)), "be1": rnd(ks[5], (planes,)),
        "m1": rnd(ks[6], (planes,)), "v1": 1.0 + 0.1 * jnp.abs(rnd(ks[7], (planes,))),
        "g2": 1.0 + rnd(ks[8], (planes,)), "be2": rnd(ks[9], (planes,)),
        "m2": rnd(ks[10], (planes,)), "v2": 1.0 + 0.1 * jnp.abs(rnd(ks[11], (planes,))),
    }


if __name__ == "__main__":
    key = jax.random.PRNGKey(0)
    k_x, k_p = jax.random.split(key)

    in_planes = planes = 16          # expansion = 1 -> identity skip needs equal channels
    B, H, W = 2, 16, 16

    x = jax.random.normal(k_x, (B, in_planes, H, W), dtype=jnp.float32)
    params = make_params(k_p, in_planes, planes)

    fwd = jax.jit(basic_block_forward)
    out = jax.block_until_ready(fwd(x, params))
    ref = jax.block_until_ready(reference_forward(x, params))

    assert out.shape == ref.shape == (B, planes, H, W)
    # Kernel feeds the MXU with bf16 operands (f32 accumulation) while the
    # reference runs f32/HIGHEST; the tolerance covers that plus BN folding.
    err = float(jnp.max(jnp.abs(out - ref)))
    assert jnp.allclose(out, ref, rtol=5e-2, atol=5e-2), f"max abs err = {err}"

    print("KERNEL_OK")
</pallas_src>

<mosaic_0001>
module attributes {stable_mosaic.version = 11 : i64} {
  func.func @kernel(%arg0: i32, %arg1: memref<1x16x640xf32, #tpu.memory_space<vmem>>, %arg2: memref<16x144xbf16, #tpu.memory_space<vmem>>, %arg3: memref<16x1xf32, #tpu.memory_space<vmem>>, %arg4: memref<16x144xbf16, #tpu.memory_space<vmem>>, %arg5: memref<16x1xf32, #tpu.memory_space<vmem>>, %arg6: memref<1x384xf32, #tpu.memory_space<vmem>>, %arg7: memref<1x16x384xf32, #tpu.memory_space<vmem>>, %arg8: memref<144x384xbf16, #tpu.memory_space<vmem>>, %arg9: memref<16x640xbf16, #tpu.memory_space<vmem>>) attributes {dimension_semantics = [#tpu.dimension_semantics<parallel>], iteration_bounds = array<i64: 2>, scalar_prefetch = 0 : i64, scratch_operands = 2 : i64, tpu.core_type = #tpu.core_type<tc>, window_params = [{transform_indices = @transform_0, window_bounds = array<i64: 1, 16, 640>}, {pipeline_mode = #tpu.pipeline_mode<synchronous>, transform_indices = @transform_1, window_bounds = array<i64: 16, 144>}, {pipeline_mode = #tpu.pipeline_mode<synchronous>, transform_indices = @transform_2, window_bounds = array<i64: 16, 1>}, {pipeline_mode = #tpu.pipeline_mode<synchronous>, transform_indices = @transform_3, window_bounds = array<i64: 16, 144>}, {pipeline_mode = #tpu.pipeline_mode<synchronous>, transform_indices = @transform_4, window_bounds = array<i64: 16, 1>}, {pipeline_mode = #tpu.pipeline_mode<synchronous>, transform_indices = @transform_5, window_bounds = array<i64: 1, 384>}, {transform_indices = @transform_6, window_bounds = array<i64: 1, 16, 384>}]} {
    %c0 = arith.constant 0 : index
    %c0_0 = arith.constant 0 : index
    %0 = vector.load %arg6[%c0, %c0_0] : memref<1x384xf32, #tpu.memory_space<vmem>>, vector<1x384xf32>
    %c0_1 = arith.constant 0 : index
    %c0_2 = arith.constant 0 : index
    %c0_3 = arith.constant 0 : index
    %1 = vector.load %arg1[%c0_1, %c0_2, %c0_3] : memref<1x16x640xf32, #tpu.memory_space<vmem>>, vector<1x16x640xf32>
    %2 = vector.shape_cast %1 : vector<1x16x640xf32> to vector<16x640xf32>
    %3 = arith.truncf %2 : vector<16x640xf32> to vector<16x640xbf16>
    %4 = vector.extract_strided_slice %3 {offsets = [0, 109], sizes = [16, 384], strides = [1, 1]} : vector<16x640xbf16> to vector<16x384xbf16>
    %c0_4 = arith.constant 0 : index
    %c0_5 = arith.constant 0 : index
    %5 = vector.load %arg8[%c0_4, %c0_5] : memref<144x384xbf16, #tpu.memory_space<vmem>>, vector<16x384xbf16>
    tpu.vector_store %arg8[%c0_4, %c0_5], %4 {strides = array<i32>} : memref<144x384xbf16, #tpu.memory_space<vmem>>, vector<16x384xbf16>,
    %6 = vector.extract_strided_slice %3 {offsets = [0, 110], sizes = [16, 384], strides = [1, 1]} : vector<16x640xbf16> to vector<16x384xbf16>
    %c16 = arith.constant 16 : index
    %c0_6 = arith.constant 0 : index
    %7 = vector.load %arg8[%c16, %c0_6] : memref<144x384xbf16, #tpu.memory_space<vmem>>, vector<16x384xbf16>
    tpu.vector_store %arg8[%c16, %c0_6], %6 {strides = array<i32>} : memref<144x384xbf16, #tpu.memory_space<vmem>>, vector<16x384xbf16>,
    %8 = vector.extract_strided_slice %3 {offsets = [0, 111], sizes = [16, 384], strides = [1, 1]} : vector<16x640xbf16> to vector<16x384xbf16>
    %c32 = arith.constant 32 : index
    %c0_7 = arith.constant 0 : index
    %9 = vector.load %arg8[%c32, %c0_7] : memref<144x384xbf16, #tpu.memory_space<vmem>>, vector<16x384xbf16>
    tpu.vector_store %arg8[%c32, %c0_7], %8 {strides = array<i32>} : memref<144x384xbf16, #tpu.memory_space<vmem>>, vector<16x384xbf16>,
    %10 = vector.extract_strided_slice %3 {offsets = [0, 127], sizes = [16, 384], strides = [1, 1]} : vector<16x640xbf16> to vector<16x384xbf16>
    %c48 = arith.constant 48 : index
    %c0_8 = arith.constant 0 : index
    %11 = vector.load %arg8[%c48, %c0_8] : memref<144x384xbf16, #tpu.memory_space<vmem>>, vector<16x384xbf16>
    tpu.vector_store %arg8[%c48, %c0_8], %10 {strides = array<i32>} : memref<144x384xbf16, #tpu.memory_space<vmem>>, vector<16x384xbf16>,
    %12 = vector.extract_strided_slice %3 {offsets = [0, 128], sizes = [16, 384], strides = [1, 1]} : vector<16x640xbf16> to vector<16x384xbf16>
    %c64 = arith.constant 64 : index
    %c0_9 = arith.constant 0 : index
    %13 = vector.load %arg8[%c64, %c0_9] : memref<144x384xbf16, #tpu.memory_space<vmem>>, vector<16x384xbf16>
    tpu.vector_store %arg8[%c64, %c0_9], %12 {strides = array<i32>} : memref<144x384xbf16, #tpu.memory_space<vmem>>, vector<16x384xbf16>,
    %14 = vector.extract_strided_slice %3 {offsets = [0, 129], sizes = [16, 384], strides = [1, 1]} : vector<16x640xbf16> to vector<16x384xbf16>
    %c80 = arith.constant 80 : index
    %c0_10 = arith.constant 0 : index
    %15 = vector.load %arg8[%c80, %c0_10] : memref<144x384xbf16, #tpu.memory_space<vmem>>, vector<16x384xbf16>
    tpu.vector_store %arg8[%c80, %c0_10], %14 {strides = array<i32>} : memref<144x384xbf16, #tpu.memory_space<vmem>>, vector<16x384xbf16>,
    %16 = vector.extract_strided_slice %3 {offsets = [0, 145], sizes = [16, 384], strides = [1, 1]} : vector<16x640xbf16> to vector<16x384xbf16>
    %c96 = arith.constant 96 : index
    %c0_11 = arith.constant 0 : index
    %17 = vector.load %arg8[%c96, %c0_11] : memref<144x384xbf16, #tpu.memory_space<vmem>>, vector<16x384xbf16>
    tpu.vector_store %arg8[%c96, %c0_11], %16 {strides = array<i32>} : memref<144x384xbf16, #tpu.memory_space<vmem>>, vector<16x384xbf16>,
    %18 = vector.extract_strided_slice %3 {offsets = [0, 146], sizes = [16, 384], strides = [1, 1]} : vector<16x640xbf16> to vector<16x384xbf16>
    %c112 = arith.constant 112 : index
    %c0_12 = arith.constant 0 : index
    %19 = vector.load %arg8[%c112, %c0_12] : memref<144x384xbf16, #tpu.memory_space<vmem>>, vector<16x384xbf16>
    tpu.vector_store %arg8[%c112, %c0_12], %18 {strides = array<i32>} : memref<144x384xbf16, #tpu.memory_space<vmem>>, vector<16x384xbf16>,
    %20 = vector.extract_strided_slice %3 {offsets = [0, 147], sizes = [16, 384], strides = [1, 1]} : vector<16x640xbf16> to vector<16x384xbf16>
    %c128 = arith.constant 128 : index
    %c0_13 = arith.constant 0 : index
    %21 = vector.load %arg8[%c128, %c0_13] : memref<144x384xbf16, #tpu.memory_space<vmem>>, vector<16x384xbf16>
    tpu.vector_store %arg8[%c128, %c0_13], %20 {strides = array<i32>} : memref<144x384xbf16, #tpu.memory_space<vmem>>, vector<16x384xbf16>,
    %c0_14 = arith.constant 0 : index
    %c0_15 = arith.constant 0 : index
    %22 = vector.load %arg2[%c0_14, %c0_15] : memref<16x144xbf16, #tpu.memory_space<vmem>>, vector<16x144xbf16>
    %c0_16 = arith.constant 0 : index
    %c0_17 = arith.constant 0 : index
    %23 = vector.load %arg8[%c0_16, %c0_17] : memref<144x384xbf16, #tpu.memory_space<vmem>>, vector<144x384xbf16>
    %cst = arith.constant dense<0.000000e+00> : vector<16x384xf32>
    %24 = tpu.matmul %22, %23, %cst {dimension_numbers = #tpu.dot_dimension_numbers<[1], [0], [0], [1], [0, 0, 1, 1], [], []>} : vector<16x144xbf16>, vector<144x384xbf16>, vector<16x384xf32> -> vector<16x384xf32>
    %c0_18 = arith.constant 0 : index
    %c0_19 = arith.constant 0 : index
    %25 = vector.load %arg3[%c0_18, %c0_19] : memref<16x1xf32, #tpu.memory_space<vmem>>, vector<16x1xf32>
    %26 = vector.broadcast %25 : vector<16x1xf32> to vector<16x384xf32>
    %27 = arith.addf %24, %26 : vector<16x384xf32>
    %cst_20 = arith.constant 0.000000e+00 : f32
    %28 = vector.broadcast %cst_20 : f32 to vector<16x384xf32>
    %29 = arith.maximumf %27, %28 : vector<16x384xf32>
    %30 = vector.broadcast %0 : vector<1x384xf32> to vector<16x384xf32>
    %31 = arith.mulf %29, %30 : vector<16x384xf32>
    %cst_21 = arith.constant 0.000000e+00 : bf16
    %32 = vector.broadcast %cst_21 : bf16 to vector<16x128xbf16>
    %c0_22 = arith.constant 0 : index
    %c0_23 = arith.constant 0 : index
    %33 = vector.load %arg9[%c0_22, %c0_23] : memref<16x640xbf16, #tpu.memory_space<vmem>>, vector<16x128xbf16>
    tpu.vector_store %arg9[%c0_22, %c0_23], %32 {strides = array<i32>} : memref<16x640xbf16, #tpu.memory_space<vmem>>, vector<16x128xbf16>,
    %cst_24 = arith.constant 0.000000e+00 : bf16
    %34 = vector.broadcast %cst_24 : bf16 to vector<16x128xbf16>
    %c0_25 = arith.constant 0 : index
    %c512 = arith.constant 512 : index
    %35 = vector.load %arg9[%c0_25, %c512] : memref<16x640xbf16, #tpu.memory_space<vmem>>, vector<16x128xbf16>
    tpu.vector_store %arg9[%c0_25, %c512], %34 {strides = array<i32>} : memref<16x640xbf16, #tpu.memory_space<vmem>>, vector<16x128xbf16>,
    %36 = arith.truncf %31 : vector<16x384xf32> to vector<16x384xbf16>
    %c0_26 = arith.constant 0 : index
    %c128_27 = arith.constant 128 : index
    %37 = vector.load %arg9[%c0_26, %c128_27] : memref<16x640xbf16, #tpu.memory_space<vmem>>, vector<16x384xbf16>
    tpu.vector_store %arg9[%c0_26, %c128_27], %36 {strides = array<i32>} : memref<16x640xbf16, #tpu.memory_space<vmem>>, vector<16x384xbf16>,
    %c0_28 = arith.constant 0 : index
    %c109 = arith.constant 109 : index
    %38 = vector.load %arg9[%c0_28, %c109] : memref<16x640xbf16, #tpu.memory_space<vmem>>, vector<16x384xbf16>
    %c0_29 = arith.constant 0 : index
    %c0_30 = arith.constant 0 : index
    %39 = vector.load %arg8[%c0_29, %c0_30] : memref<144x384xbf16, #tpu.memory_space<vmem>>, vector<16x384xbf16>
    tpu.vector_store %arg8[%c0_29, %c0_30], %38 {strides = array<i32>} : memref<144x384xbf16, #tpu.memory_space<vmem>>, vector<16x384xbf16>,
    %c0_31 = arith.constant 0 : index
    %c110 = arith.constant 110 : index
    %40 = vector.load %arg9[%c0_31, %c110] : memref<16x640xbf16, #tpu.memory_space<vmem>>, vector<16x384xbf16>
    %c16_32 = arith.constant 16 : index
    %c0_33 = arith.constant 0 : index
    %41 = vector.load %arg8[%c16_32, %c0_33] : memref<144x384xbf16, #tpu.memory_space<vmem>>, vector<16x384xbf16>
    tpu.vector_store %arg8[%c16_32, %c0_33], %40 {strides = array<i32>} : memref<144x384xbf16, #tpu.memory_space<vmem>>, vector<16x384xbf16>,
    %c0_34 = arith.constant 0 : index
    %c111 = arith.constant 111 : index
    %42 = vector.load %arg9[%c0_34, %c111] : memref<16x640xbf16, #tpu.memory_space<vmem>>, vector<16x384xbf16>
    %c32_35 = arith.constant 32 : index
    %c0_36 = arith.constant 0 : index
    %43 = vector.load %arg8[%c32_35, %c0_36] : memref<144x384xbf16, #tpu.memory_space<vmem>>, vector<16x384xbf16>
    tpu.vector_store %arg8[%c32_35, %c0_36], %42 {strides = array<i32>} : memref<144x384xbf16, #tpu.memory_space<vmem>>, vector<16x384xbf16>,
    %c0_37 = arith.constant 0 : index
    %c127 = arith.constant 127 : index
    %44 = vector.load %arg9[%c0_37, %c127] : memref<16x640xbf16, #tpu.memory_space<vmem>>, vector<16x384xbf16>
    %c48_38 = arith.constant 48 : index
    %c0_39 = arith.constant 0 : index
    %45 = vector.load %arg8[%c48_38, %c0_39] : memref<144x384xbf16, #tpu.memory_space<vmem>>, vector<16x384xbf16>
    tpu.vector_store %arg8[%c48_38, %c0_39], %44 {strides = array<i32>} : memref<144x384xbf16, #tpu.memory_space<vmem>>, vector<16x384xbf16>,
    %c0_40 = arith.constant 0 : index
    %c128_41 = arith.constant 128 : index
    %46 = vector.load %arg9[%c0_40, %c128_41] : memref<16x640xbf16, #tpu.memory_space<vmem>>, vector<16x384xbf16>
    %c64_42 = arith.constant 64 : index
    %c0_43 = arith.constant 0 : index
    %47 = vector.load %arg8[%c64_42, %c0_43] : memref<144x384xbf16, #tpu.memory_space<vmem>>, vector<16x384xbf16>
    tpu.vector_store %arg8[%c64_42, %c0_43], %46 {strides = array<i32>} : memref<144x384xbf16, #tpu.memory_space<vmem>>, vector<16x384xbf16>,
    %c0_44 = arith.constant 0 : index
    %c129 = arith.constant 129 : index
    %48 = vector.load %arg9[%c0_44, %c129] : memref<16x640xbf16, #tpu.memory_space<vmem>>, vector<16x384xbf16>
    %c80_45 = arith.constant 80 : index
    %c0_46 = arith.constant 0 : index
    %49 = vector.load %arg8[%c80_45, %c0_46] : memref<144x384xbf16, #tpu.memory_space<vmem>>, vector<16x384xbf16>
    tpu.vector_store %arg8[%c80_45, %c0_46], %48 {strides = array<i32>} : memref<144x384xbf16, #tpu.memory_space<vmem>>, vector<16x384xbf16>,
    %c0_47 = arith.constant 0 : index
    %c145 = arith.constant 145 : index
    %50 = vector.load %arg9[%c0_47, %c145] : memref<16x640xbf16, #tpu.memory_space<vmem>>, vector<16x384xbf16>
    %c96_48 = arith.constant 96 : index
    %c0_49 = arith.constant 0 : index
    %51 = vector.load %arg8[%c96_48, %c0_49] : memref<144x384xbf16, #tpu.memory_space<vmem>>, vector<16x384xbf16>
    tpu.vector_store %arg8[%c96_48, %c0_49], %50 {strides = array<i32>} : memref<144x384xbf16, #tpu.memory_space<vmem>>, vector<16x384xbf16>,
    %c0_50 = arith.constant 0 : index
    %c146 = arith.constant 146 : index
    %52 = vector.load %arg9[%c0_50, %c146] : memref<16x640xbf16, #tpu.memory_space<vmem>>, vector<16x384xbf16>
    %c112_51 = arith.constant 112 : index
    %c0_52 = arith.constant 0 : index
    %53 = vector.load %arg8[%c112_51, %c0_52] : memref<144x384xbf16, #tpu.memory_space<vmem>>, vector<16x384xbf16>
    tpu.vector_store %arg8[%c112_51, %c0_52], %52 {strides = array<i32>} : memref<144x384xbf16, #tpu.memory_space<vmem>>, vector<16x384xbf16>,
    %c0_53 = arith.constant 0 : index
    %c147 = arith.constant 147 : index
    %54 = vector.load %arg9[%c0_53, %c147] : memref<16x640xbf16, #tpu.memory_space<vmem>>, vector<16x384xbf16>
    %c128_54 = arith.constant 128 : index
    %c0_55 = arith.constant 0 : index
    %55 = vector.load %arg8[%c128_54, %c0_55] : memref<144x384xbf16, #tpu.memory_space<vmem>>, vector<16x384xbf16>
    tpu.vector_store %arg8[%c128_54, %c0_55], %54 {strides = array<i32>} : memref<144x384xbf16, #tpu.memory_space<vmem>>, vector<16x384xbf16>,
    %c0_56 = arith.constant 0 : index
    %c0_57 = arith.constant 0 : index
    %56 = vector.load %arg4[%c0_56, %c0_57] : memref<16x144xbf16, #tpu.memory_space<vmem>>, vector<16x144xbf16>
    %c0_58 = arith.constant 0 : index
    %c0_59 = arith.constant 0 : index
    %57 = vector.load %arg8[%c0_58, %c0_59] : memref<144x384xbf16, #tpu.memory_space<vmem>>, vector<144x384xbf16>
    %cst_60 = arith.constant dense<0.000000e+00> : vector<16x384xf32>
    %58 = tpu.matmul %56, %57, %cst_60 {dimension_numbers = #tpu.dot_dimension_numbers<[1], [0], [0], [1], [0, 0, 1, 1], [], []>} : vector<16x144xbf16>, vector<144x384xbf16>, vector<16x384xf32> -> vector<16x384xf32>
    %59 = vector.extract_strided_slice %2 {offsets = [0, 128], sizes = [16, 384], strides = [1, 1]} : vector<16x640xf32> to vector<16x384xf32>
    %c0_61 = arith.constant 0 : index
    %c0_62 = arith.constant 0 : index
    %60 = vector.load %arg5[%c0_61, %c0_62] : memref<16x1xf32, #tpu.memory_space<vmem>>, vector<16x1xf32>
    %61 = vector.broadcast %60 : vector<16x1xf32> to vector<16x384xf32>
    %62 = arith.addf %58, %61 : vector<16x384xf32>
    %63 = arith.addf %62, %59 : vector<16x384xf32>
    %cst_63 = arith.constant 0.000000e+00 : f32
    %64 = vector.broadcast %cst_63 : f32 to vector<16x384xf32>
    %65 = arith.maximumf %63, %64 : vector<16x384xf32>
    %c0_64 = arith.constant 0 : index
    %c0_65 = arith.constant 0 : index
    %c0_66 = arith.constant 0 : index
    %66 = vector.load %arg7[%c0_64, %c0_65, %c0_66] : memref<1x16x384xf32, #tpu.memory_space<vmem>>, vector<1x16x384xf32>
    %67 = vector.shape_cast %66 : vector<1x16x384xf32> to vector<16x384xf32>
    %68 = vector.shape_cast %65 : vector<16x384xf32> to vector<1x16x384xf32>
    tpu.vector_store %arg7[%c0_64, %c0_65, %c0_66], %68 {strides = array<i32>} : memref<1x16x384xf32, #tpu.memory_space<vmem>>, vector<1x16x384xf32>,
    return
  }
  func.func @transform_0(%arg0: i32) -> (i32, i32, i32) {
    %c0_i32 = arith.constant 0 : i32
    %c0_i32_0 = arith.constant 0 : i32
    %c0_i32_1 = arith.constant 0 : i32
    return %arg0, %c0_i32, %c0_i32_0 : i32, i32, i32
  }
  func.func @transform_1(%arg0: i32) -> (i32, i32) {
    %c0_i32 = arith.constant 0 : i32
    %c0_i32_0 = arith.constant 0 : i32
    %c0_i32_1 = arith.constant 0 : i32
    return %c0_i32, %c0_i32_0 : i32, i32
  }
  func.func @transform_2(%arg0: i32) -> (i32, i32) {
    %c0_i32 = arith.constant 0 : i32
    %c0_i32_0 = arith.constant 0 : i32
    %c0_i32_1 = arith.constant 0 : i32
    return %c0_i32, %c0_i32_0 : i32, i32
  }
  func.func @transform_3(%arg0: i32) -> (i32, i32) {
    %c0_i32 = arith.constant 0 : i32
    %c0_i32_0 = arith.constant 0 : i32
    %c0_i32_1 = arith.constant 0 : i32
    return %c0_i32, %c0_i32_0 : i32, i32
  }
  func.func @transform_4(%arg0: i32) -> (i32, i32) {
    %c0_i32 = arith.constant 0 : i32
    %c0_i32_0 = arith.constant 0 : i32
    %c0_i32_1 = arith.constant 0 : i32
    return %c0_i32, %c0_i32_0 : i32, i32
  }
  func.func @transform_5(%arg0: i32) -> (i32, i32) {
    %c0_i32 = arith.constant 0 : i32
    %c0_i32_0 = arith.constant 0 : i32
    %c0_i32_1 = arith.constant 0 : i32
    return %c0_i32, %c0_i32_0 : i32, i32
  }
  func.func @transform_6(%arg0: i32) -> (i32, i32, i32) {
    %c0_i32 = arith.constant 0 : i32
    %c0_i32_0 = arith.constant 0 : i32
    %c0_i32_1 = arith.constant 0 : i32
    return %arg0, %c0_i32, %c0_i32_0 : i32, i32, i32
  }
}

</mosaic_0001>

<bundles_post_ra>
// kernel: basic_block_forward.1
= control target key start
LH: loop header
LB: loop body
LE: loop exit
PB: predicated region body
PF: predicated region fallthrough
CT: control target
= control target key end

     0   :  { %s1715_s21 = smov 0   ;;  %s2073_s0 = inlined_call_operand.vmem [shape: f32[2,16,640], index: 0, kind: input, shape index: {}]   ;;  %s2074_s1 = inlined_call_operand.vmem [shape: bf16[16,144], index: 1, kind: input, shape index: {}]   ;;  %s2075_s2 = inlined_call_operand.vmem [shape: f32[16,1], index: 2, kind: input, shape index: {}]   ;;  %s2076_s3 = inlined_call_operand.vmem [shape: bf16[16,144], index: 3, kind: input, shape index: {}]   ;;  %s2077_s4 = inlined_call_operand.vmem [shape: f32[16,1], index: 4, kind: input, shape index: {}]   ;;  %s2078_s5 = inlined_call_operand.vmem [shape: f32[1,384], index: 5, kind: input, shape index: {}]   ;;  %s2079_s6 = inlined_call_operand.vmem [shape: f32[2,16,384], index: 6, kind: output, shape index: {}]  }
   0x1 LB: > { %s1509_s22 = sadd.s32 4294967295, %s1669_s21   ;;  %p1513_p0 = scmp.ge.s32.totalorder %s1669_s21, 1  ;;  %s1669_s21 = sphi %s1715_s21, %s16_s21  }
   0x2   : > { %p212_p1 = scmp.lt.s32.totalorder %s1669_s21, 3 }
   0x4   : > { %p213_p2 = pnand %p1513_p0, %p212_p1 }
   0x5   : > { %p242_p3 = scmp.lt.s32.totalorder (!%p213_p2), %s1509_s22, 1  ;;  %s1671_s27 = smov (!%p213_p2), 110  }
   0x6   : > { %216 = sbr.rel (%p213_p2) target bundleno = 810 (0x32a), region = 44  ;;  %s1673_s28 = smov (!%p213_p2), 111  }
   0x7   : > { %s1674_s29 = smov (!%p213_p2), 127   ;;  %s1675_s30 = smov (!%p213_p2), 1  }
   0x8   : > { %s1676_s7 = smov (!%p213_p2), 17   ;;  %s1677_s8 = smov (!%p213_p2), 18  }
   0x9   : > { %s1678_s9 = smov (!%p213_p2), 19   ;;  %s1679_s12 = smov (!%p213_p2), 109  }
   0xb   : > { %s2081_s22 = smov (!%p242_p3, %s1509_s22), 1  ;;  %v1672_v14 = vmov 0   ;;  %v1640_v23 = vld [vmem:[%s2074_s1 + $0x4] ss:$8 sps:$4 sm:$0xff]   ;;  %vm722_vm0 = vcmask 130048   ;;  %vm297_vm1 = vcmask 1043456  }
   0xc   : > { %s1608_s23 = smul.u32 80, %s2081_s22  ;;  %769 = vmatprep.subr.bf16.mxu1 %v1672_v14  ;;  %838 = vst [vmem:[#allocation3] sm:$0xf] %v1672_v14  ;;  %839 = vst [vmem:[#allocation3 + $0x14] sm:$0xf] %v1672_v14  ;;  %1627 = vset.pattern.permute.xlu0 %v1672_v14  ;;  %v557_v24 = vld [vmem:[%s2075_s2] sm:$0xff] }
   0xd   : > { %840 = vst [vmem:[#allocation3 + $0x10] sm:$0xf] %v1672_v14  ;;  %841 = vst [vmem:[#allocation3 + $0x24] sm:$0xf] %v1672_v14  ;;  %1628 = vset.pattern.permute.xlu1 %v1672_v14  ;;  %1556 = vmatprep.mubr.msk.bf16.mxu1 %vm722_vm0, %v1640_v23  ;;  %v558_v25 = vld [vmem:[%s2075_s2 + $0x8] sm:$0xff]  ;;  %vm478_vm2 = vcmask 900096  }
   0xe   : > { %s1729_s26 = scalar_lea.vmem %s2073_s0, %s1608_s23  ;;  %1555 = vmatprep.mubr.msk.bf16.mxu0 %vm722_vm0, %v1640_v23  ;;  %vm451_vm3 = vcmask 908288   ;;  %vm424_vm4 = vcmask 1039360   ;;  %vm380_vm5 = vcmask 7168   ;;  %vm353_vm6 = vcmask 138240  }
   0xf   : > { %v1732_v0 = vld [vmem:[%s1729_s26 + $0x30] sm:$0xff]  ;;  %v1735_v1 = vld [vmem:[%s1729_s26 + $0x38] sm:$0xff]  ;;  %v1738_v2 = vld [vmem:[%s1729_s26 + $0x8] sm:$0xff]  ;;  %vm326_vm7 = vcmask 146432   ;;  %vm299_vm8 = vcmask 154624   ;;  %vm505_vm9 = vcmask 891904  }
  0x10   : > { %v1742_v3 = vpack.c.bf16 %v1735_v1, %v1732_v0  ;;  %v1745_v4 = vld [vmem:[%s1729_s26 + $0x10] sm:$0xff]  ;;  %v262_v5 = vld [vmem:[%s1729_s26 + $0x40] sm:$0xff]  ;;  %v263_v6 = vld [vmem:[%s1729_s26 + $0x48] sm:$0xff]  ;;  %v1660_v16 = vpack.c.bf16 %v1732_v0, %v1738_v2 }
  0x11   : > { %v1751_v7 = vpack.c.bf16 %v1745_v4, %v1738_v2  ;;  %v1601_v8 = vpack.c.bf16 %v262_v5, %v262_v5  ;;  %v257_v9 = vld [vmem:[%s1729_s26 + $0x18] sm:$0xff]  ;;  %v258_v10 = vld [vmem:[%s1729_s26 + $0x20] sm:$0xff]  ;;  %v1603_v11 = vpack.c.bf16 %v263_v6, %v262_v5  ;;  %v1659_v15 = vpack.c.bf16 %v1735_v1, %v1745_v4  ;;  %v259_v20 = vld [vmem:[%s1729_s26 + $0x28] sm:$0xff] }
  0x12   : > { %469 = vrot.lane.b32.xlu1 %v1742_v3, %s1671_s27  ;;  %v1599_v12 = vpack.c.bf16 %v257_v9, %v257_v9  ;;  %v1602_v13 = vpack.c.bf16 %v258_v10, %v257_v9  ;;  %v254_v17 = vld [vmem:[%s1729_s26] sm:$0xff]  ;;  %v1595_v18 = vpack.c.bf16 %v257_v9, %v1745_v4  ;;  %v1597_v21 = vpack.c.bf16 %v262_v5, %v1735_v1 }
  0x13   : > { %465 = vrot.lane.b32.xlu0 %v1751_v7, %s1671_s27  ;;  %405 = vst [vmem:[#allocation2 + $0x74] sm:$0xf] %v1601_v8  ;;  %v1594_v19 = vpack.c.bf16 %v1738_v2, %v254_v17  ;;  %v1596_v22 = vpack.c.bf16 %v1732_v0, %v259_v20 }
  0x14   : > { %403 = vst [vmem:[#allocation2 + $0x68] sm:$0xf] %v1599_v12 }
  0x16   : > { %471 = vrot.lane.b32.xlu1 %v1603_v11, %s1671_s27 }
  0x17   : > { %467 = vrot.lane.b32.xlu0 %v1602_v13, %s1671_s27 }
  0x1a   : > { %440 = vrot.lane.b32.xlu1 %v1602_v13, %s1673_s28 }
  0x1b   : > { %438 = vrot.lane.b32.xlu0 %v1751_v7, %s1673_s28 }
  0x1e   : > { %444 = vrot.lane.b32.xlu1 %v1603_v11, %s1673_s28 }
  0x1f   : > { %442 = vrot.lane.b32.xlu0 %v1742_v3, %s1673_s28 }
  0x22   : > { %413 = vrot.lane.b32.xlu1 %v1602_v13, %s1674_s29 }
  0x23   : > { %411 = vrot.lane.b32.xlu0 %v1751_v7, %s1674_s29 }
  0x26   : > { %417 = vrot.lane.b32.xlu1 %v1603_v11, %s1674_s29 }
  0x27   : > { %415 = vrot.lane.b32.xlu0 %v1742_v3, %s1674_s29 }
  0x2a   : > { %369 = vrot.lane.b32.xlu1 %v1595_v18, %s1675_s30 }
  0x2b   : > { %367 = vrot.lane.b32.xlu0 %v1594_v19, %s1675_s30 }
  0x2e   : > { %373 = vrot.lane.b32.xlu1 %v1597_v21, %s1675_s30 }
  0x2f   : > { %371 = vrot.lane.b32.xlu0 %v1596_v22, %s1675_s30 }
  0x32   : > { %342 = vrot.lane.b32.xlu1 %v1595_v18, %s1676_s7 }
  0x33   : > { %340 = vrot.lane.b32.xlu0 %v1594_v19, %s1676_s7 }
  0x36   : > { %346 = vrot.lane.b32.xlu1 %v1597_v21, %s1676_s7 }
  0x37   : > { %344 = vrot.lane.b32.xlu0 %v1596_v22, %s1676_s7 }
  0x3a   : > { %315 = vrot.lane.b32.xlu1 %v1595_v18, %s1677_s8 }
  0x3b   : > { %313 = vrot.lane.b32.xlu0 %v1594_v19, %s1677_s8 }
  0x3e   : > { %319 = vrot.lane.b32.xlu1 %v1597_v21, %s1677_s8 }
  0x3f   : > { %317 = vrot.lane.b32.xlu0 %v1596_v22, %s1677_s8 }
  0x42   : > { %287 = vrot.lane.b32.xlu1 %v1595_v18, %s1678_s9 }
  0x43   : > { %285 = vrot.lane.b32.xlu0 %v1594_v19, %s1678_s9 }
  0x46   : > { %291 = vrot.lane.b32.xlu1 %v1597_v21, %s1678_s9 }
  0x47   : > { %289 = vrot.lane.b32.xlu0 %v1596_v22, %s1678_s9 }
  0x4a   : > { %494 = vrot.lane.b32.xlu1 %v1602_v13, %s1679_s12 }
  0x4b   : > { %492 = vrot.lane.b32.xlu0 %v1751_v7, %s1679_s12 }
  0x4e   : > { %498 = vrot.lane.b32.xlu1 %v1603_v11, %s1679_s12 }
  0x4f   : > { %496 = vrot.lane.b32.xlu0 %v1742_v3, %s1679_s12 }
  0x52   : > { %566 = vperm.xlu1 %1628, %v558_v25  }
  0x53   : > { %561 = vperm.xlu0 %1627, %v557_v24  }
  0x84   : > { %v470_v26 = vpop.permute.xlu1 %469 }
  0x85   : > { %v466_v27 = vpop.permute.xlu0 %465  ;;  %v475_v30 = vrot.slane %v470_v26, 4 }
  0x86   : > { %v473_v28 = vrot.slane %v466_v27, 4 }
  0x88   : > { %v472_v29 = vpop.permute.xlu1 %471 }
  0x89   : > { %v476_v31 = vrot.slane %v472_v29, 4  ;;  %v468_v32 = vpop.permute.xlu0 %467 }
  0x8a   : > { %v474_v33 = vrot.slane %v468_v32, 4 }
  0x8b   : > { %v481_v34 = vsel %vm297_vm1, %v475_v30, %v476_v31  ;;  %v483_v35 = vsel %vm478_vm2, %v472_v29, %v476_v31 }
  0x8c   : > { %v482_v36 = vsel %vm478_vm2, %v470_v26, %v481_v34  ;;  %491 = vst [vmem:[#allocation2 + $0xbc] sm:$0xf] %v483_v35  ;;  %v477_v37 = vsel %vm297_vm1, %v473_v28, %v474_v33  ;;  %v480_v38 = vsel %vm478_vm2, %v468_v32, %v474_v33  ;;  %v441_v39 = vpop.permute.xlu1 %440 }
  0x8d   : > { %v479_v40 = vsel %vm478_vm2, %v466_v27, %v477_v37  ;;  %489 = vst [vmem:[#allocation2 + $0xb0] sm:$0xf] %v480_v38  ;;  %v447_v41 = vrot.slane %v441_v39, 4  ;;  %v439_v42 = vpop.permute.xlu0 %438  ;;  %v1632_v37 = vld [vmem:[#allocation2 + $0x68] ss:$12 sps:$4 sm:$0xff]  }
  0x8e   : > { %v446_v43 = vrot.slane %v439_v42, 4  ;;  %v1550_v44 = vcombine.high %v479_v40, %v482_v36  ;;  %v1549_v45 = vcombine.low %v479_v40, %v482_v36 }
  0x8f   : > { %v453_v46 = vsel %vm451_vm3, %v441_v39, %v447_v41 }
  0x90   : > { %462 = vst [vmem:[#allocation2 + $0x98] sm:$0xf] %v453_v46  ;;  %v445_v47 = vpop.permute.xlu1 %444  ;;  %726 = vmatprep.subr.bf16.mxu0 %v1550_v44  ;;  %v450_v50 = vsel %vm297_vm1, %v446_v43, %v447_v41 }
  0x91   : > { %v449_v48 = vrot.slane %v445_v47, 4  ;;  %v443_v49 = vpop.permute.xlu0 %442  ;;  %727 = vmatpush1.bf16.msra.mxu0 %v1549_v45  ;;  %v452_v56 = vsel %vm451_vm3, %v439_v42, %v450_v50 }
  0x92   : > { %v448_v51 = vrot.slane %v443_v49, 4 }
  0x93   : > { %v456_v52 = vsel %vm451_vm3, %v445_v47, %v449_v48 }
  0x94   : > { %464 = vst [vmem:[#allocation2 + $0xa4] sm:$0xf] %v456_v52  ;;  %v454_v53 = vsel %vm297_vm1, %v448_v51, %v449_v48  ;;  %v414_v54 = vpop.permute.xlu1 %413  ;;  %v1629_v55 = vld [vmem:[#allocation2 + $0xb0] ss:$12 sps:$4 sm:$0xff]  }
  0x95   : > { %v455_v57 = vsel %vm451_vm3, %v443_v49, %v454_v53  ;;  %v420_v58 = vrot.slane %v414_v54, 4  ;;  %v412_v59 = vpop.permute.xlu0 %411  ;;  %770 = vmatpush1.bf16.msra.mxu1 %v1629_v55 }
  0x96   : > { %v419_v60 = vrot.slane %v412_v59, 4  ;;  %v1547_v61 = vcombine.high %v452_v56, %v455_v57  ;;  %v1546_v62 = vcombine.low %v452_v56, %v455_v57  ;;  %771 = vmatprep.subr.bf16.mxu1 %v1672_v14 }
  0x97   : > { %v426_v63 = vsel %vm424_vm4, %v414_v54, %v420_v58 }
  0x98   : > { %435 = vst [vmem:[#allocation2 + $0x80] sm:$0xf] %v426_v63  ;;  %v418_v3 = vpop.permute.xlu1 %417  ;;  %728 = vmatprep.subr.bf16.mxu0 %v1547_v61  ;;  %v423_v7 = vsel %vm297_vm1, %v419_v60, %v420_v58 }
  0x99   : > { %v422_v5 = vrot.slane %v418_v3, 4  ;;  %v416_v6 = vpop.permute.xlu0 %415  ;;  %729 = vmatpush1.bf16.msra.mxu0 %v1546_v62  ;;  %v425_v13 = vsel %vm424_vm4, %v412_v59, %v423_v7 }
  0x9a   : > { %v421_v8 = vrot.slane %v416_v6, 4 }
  0x9b   : > { %v429_v9 = vsel %vm424_vm4, %v418_v3, %v422_v5  ;;  %v1630_v10 = vld [vmem:[#allocation2 + $0x98] ss:$12 sps:$4 sm:$0xff]  }
  0x9c   : > { %437 = vst [vmem:[#allocation2 + $0x8c] sm:$0xf] %v429_v9  ;;  %v427_v11 = vsel %vm297_vm1, %v421_v8, %v422_v5  ;;  %v370_v12 = vpop.permute.xlu1 %369  ;;  %772 = vmatpush1.bf16.msra.mxu1 %v1630_v10 }
  0x9d   : > { %v428_v17 = vsel %vm424_vm4, %v416_v6, %v427_v11  ;;  %v376_v18 = vrot.slane %v370_v12, 4  ;;  %v368_v19 = vpop.permute.xlu0 %367  ;;  %773 = vmatprep.subr.bf16.mxu1 %v1672_v14 }
  0x9e   : > { %v375_v20 = vrot.slane %v368_v19, 4  ;;  %v1544_v21 = vcombine.high %v425_v13, %v428_v17  ;;  %v1543_v22 = vcombine.low %v425_v13, %v428_v17 }
  0x9f   : > { %v382_v23 = vsel %vm380_vm5, %v370_v12, %v376_v18 }
  0xa0   : > { %391 = vst [vmem:[#allocation2 + $0x50] sm:$0xf] %v382_v23  ;;  %v374_v24 = vpop.permute.xlu1 %373  ;;  %730 = vmatprep.subr.bf16.mxu0 %v1544_v21  ;;  %v379_v27 = vsel %vm297_vm1, %v375_v20, %v376_v18 }
  0xa1   : > { %v378_v25 = vrot.slane %v374_v24, 4  ;;  %v372_v26 = vpop.permute.xlu0 %371  ;;  %731 = vmatpush1.bf16.msra.mxu0 %v1543_v22  ;;  %v381_v33 = vsel %vm380_vm5, %v368_v19, %v379_v27 }
  0xa2   : > { %v377_v28 = vrot.slane %v372_v26, 4  ;;  %732 = vmatprep.subr.bf16.mxu0 %v1659_v15 }
  0xa3   : > { %v385_v29 = vsel %vm380_vm5, %v374_v24, %v378_v25  ;;  %v1631_v30 = vld [vmem:[#allocation2 + $0x80] ss:$12 sps:$4 sm:$0xff]  }
  0xa4   : > { %393 = vst [vmem:[#allocation2 + $0x5c] sm:$0xf] %v385_v29  ;;  %v383_v31 = vsel %vm297_vm1, %v377_v28, %v378_v25  ;;  %v343_v32 = vpop.permute.xlu1 %342  ;;  %774 = vmatpush1.bf16.msra.mxu1 %v1631_v30 }
  0xa5   : > { %v384_v34 = vsel %vm380_vm5, %v372_v26, %v383_v31  ;;  %v349_v35 = vrot.slane %v343_v32, 4  ;;  %v341_v36 = vpop.permute.xlu0 %340  ;;  %733 = vmatpush1.bf16.msra.mxu0 %v1660_v16  ;;  %775 = vmatprep.subr.bf16.mxu1 %v1672_v14 }
  0xa6   : > { %v348_v1 = vrot.slane %v341_v36, 4  ;;  %v1538_v4 = vcombine.high %v381_v33, %v384_v34  ;;  %v1537_v15 = vcombine.low %v381_v33, %v384_v34 }
  0xa7   : > { %v355_v38 = vsel %vm353_vm6, %v343_v32, %v349_v35 }
  0xa8   : > { %364 = vst [vmem:[#allocation2 + $0x38] sm:$0xf] %v355_v38  ;;  %v347_v39 = vpop.permute.xlu1 %346  ;;  %734 = vmatprep.subr.bf16.mxu0 %v1538_v4  ;;  %776 = vmatpush1.bf16.msra.mxu1 %v1632_v37  ;;  %v352_v42 = vsel %vm297_vm1, %v348_v1, %v349_v35 }
  0xa9   : > { %v351_v40 = vrot.slane %v347_v39, 4  ;;  %v345_v41 = vpop.permute.xlu0 %344  ;;  %735 = vmatpush1.bf16.msra.mxu0 %v1537_v15  ;;  %777 = vmatprep.subr.bf16.mxu1 %v1672_v14  ;;  %v354_v45 = vsel %vm353_vm6, %v341_v36, %v352_v42 }
  0xaa   : > { %v350_v43 = vrot.slane %v345_v41, 4 }
  0xab   : > { %v358_v0 = vsel %vm353_vm6, %v347_v39, %v351_v40  ;;  %v1633_v2 = vld [vmem:[#allocation2 + $0x50] ss:$12 sps:$4 sm:$0xff]   ;;  %v1638_v39 = vld [vmem:[%s2074_s1] ss:$8 sps:$4 sm:$0xff]  }
  0xac   : > { %366 = vst [vmem:[#allocation2 + $0x44] sm:$0xf] %v358_v0  ;;  %v356_v16 = vsel %vm297_vm1, %v350_v43, %v351_v40  ;;  %v316_v44 = vpop.permute.xlu1 %315  ;;  %778 = vmatpush1.bf16.msra.mxu1 %v1633_v2  ;;  %v253_v2 = vld [vmem:[%s2078_s5] sm:$0x7] }
  0xad   : > { %v357_v46 = vsel %vm353_vm6, %v345_v41, %v356_v16  ;;  %v322_v47 = vrot.slane %v316_v44, 4  ;;  %v314_v48 = vpop.permute.xlu0 %313  ;;  %779 = vmatprep.subr.bf16.mxu1 %v1672_v14  ;;  %v817_v41 = vlaneseq }
  0xae   : > { %v321_v49 = vrot.slane %v314_v48, 4  ;;  %v1535_v50 = vcombine.high %v354_v45, %v357_v46  ;;  %v1534_v51 = vcombine.low %v354_v45, %v357_v46 }
  0xaf   : > { %v328_v52 = vsel %vm326_vm7, %v316_v44, %v322_v47  ;;  %v818_v42 = vshrl.u32 %v817_v41, 7 }
  0xb0   : > { %337 = vst [vmem:[#allocation2 + $0x20] sm:$0xf] %v328_v52  ;;  %v320_v53 = vpop.permute.xlu1 %319  ;;  %736 = vmatprep.subr.bf16.mxu0 %v1535_v50  ;;  %v325_v56 = vsel %vm297_vm1, %v321_v49, %v322_v47 }
  0xb1   : > { %v324_v54 = vrot.slane %v320_v53, 4  ;;  %v318_v55 = vpop.permute.xlu0 %317  ;;  %737 = vmatpush1.bf16.msra.mxu0 %v1534_v51  ;;  %v327_v62 = vsel %vm326_vm7, %v314_v48, %v325_v56  ;;  %v819_v43 = vsub.s32 0, %v818_v42  ;;  %v823_v16 = vsub.s32 1, %v818_v42 }
  0xb2   : > { %v323_v57 = vrot.slane %v318_v55, 4  ;;  %v827_v45 = vsub.s32 2, %v818_v42 }
  0xb3   : > { %v331_v58 = vsel %vm326_vm7, %v320_v53, %v324_v54  ;;  %v1634_v59 = vld [vmem:[#allocation2 + $0x38] ss:$12 sps:$4 sm:$0xff]   ;;  %v820_v47 = vrot.slane %v253_v2, %v819_v43  ;;  %v824_v52 = vrot.slane %v253_v2, %v823_v16 }
  0xb4   : > { %339 = vst [vmem:[#allocation2 + $0x2c] sm:$0xf] %v331_v58  ;;  %v329_v60 = vsel %vm297_vm1, %v323_v57, %v324_v54  ;;  %v288_v61 = vpop.permute.xlu1 %287  ;;  %780 = vmatpush1.bf16.msra.mxu1 %v1634_v59  ;;  %v828_v54 = vrot.slane %v253_v2, %v827_v45 }
  0xb5   : > { %v330_v63 = vsel %vm326_vm7, %v318_v55, %v329_v60  ;;  %v294_v3 = vrot.slane %v288_v61, 4  ;;  %v286_v5 = vpop.permute.xlu0 %285  ;;  %781 = vmatprep.subr.bf16.mxu1 %v1672_v14 }
  0xb6   : > { %v293_v6 = vrot.slane %v286_v5, 4  ;;  %v1532_v7 = vcombine.high %v327_v62, %v330_v63  ;;  %v1531_v8 = vcombine.low %v327_v62, %v330_v63 }
  0xb7   : > { %v301_v9 = vsel %vm299_vm8, %v288_v61, %v294_v3 }
  0xb8   : > { %310 = vst [vmem:[#allocation2 + $0x8] sm:$0xf] %v301_v9  ;;  %v292_v10 = vpop.permute.xlu1 %291  ;;  %738 = vmatprep.subr.bf16.mxu0 %v1532_v7  ;;  %v298_v13 = vsel %vm297_vm1, %v293_v6, %v294_v3 }
  0xb9   : > { %v296_v11 = vrot.slane %v292_v10, 4  ;;  %v290_v12 = vpop.permute.xlu0 %289  ;;  %739 = vmatpush1.bf16.msra.mxu0 %v1531_v8  ;;  %v300_v22 = vsel %vm299_vm8, %v286_v5, %v298_v13 }
  0xba   : > { %v295_v17 = vrot.slane %v290_v12, 4 }
  0xbb   : > { %v304_v18 = vsel %vm299_vm8, %v292_v10, %v296_v11  ;;  %v1635_v19 = vld [vmem:[#allocation2 + $0x20] ss:$12 sps:$4 sm:$0xff]  }
  0xbc   : > { %312 = vst [vmem:[#allocation2 + $0x14] sm:$0xf] %v304_v18  ;;  %v302_v20 = vsel %vm297_vm1, %v295_v17, %v296_v11  ;;  %v495_v21 = vpop.permute.xlu1 %494  ;;  %782 = vmatpush1.bf16.msra.mxu1 %v1635_v19 }
  0xbd   : > { %v303_v23 = vsel %vm299_vm8, %v290_v12, %v302_v20  ;;  %v501_v24 = vrot.slane %v495_v21, 4  ;;  %v493_v25 = vpop.permute.xlu0 %492  ;;  %783 = vmatprep.subr.bf16.mxu1 %v1672_v14 }
  0xbe   : > { %v500_v26 = vrot.slane %v493_v25, 4  ;;  %v1529_v27 = vcombine.high %v300_v22, %v303_v23  ;;  %v1528_v28 = vcombine.low %v300_v22, %v303_v23 }
  0xbf   : > { %v507_v29 = vsel %vm505_vm9, %v495_v21, %v501_v24 }
  0xc0   : > { %516 = vst [vmem:[#allocation2 + $0xc8] sm:$0xf] %v507_v29  ;;  %v499_v30 = vpop.permute.xlu1 %498  ;;  %740 = vmatprep.subr.bf16.mxu0 %v1529_v27  ;;  %v504_v33 = vsel %vm297_vm1, %v500_v26, %v501_v24 }
  0xc1   : > { %v503_v31 = vrot.slane %v499_v30, 4  ;;  %v497_v32 = vpop.permute.xlu0 %496  ;;  %741 = vmatpush1.bf16.msra.mxu0 %v1528_v28  ;;  %v506_v1 = vsel %vm505_vm9, %v493_v25, %v504_v33  ;;  %v1650_v33 = vld [vmem:[%s2076_s3 + $0x4] ss:$8 sps:$4 sm:$0xff]  }
  0xc2   : > { %v502_v34 = vrot.slane %v497_v32, 4 }
  0xc3   : > { %v510_v35 = vsel %vm505_vm9, %v499_v30, %v503_v31  ;;  %v1636_v36 = vld [vmem:[#allocation2 + $0x8] ss:$12 sps:$4 sm:$0xff]  }
  0xc4   : > { %518 = vst [vmem:[#allocation2 + $0xd4] sm:$0xf] %v510_v35  ;;  %v508_v37 = vsel %vm297_vm1, %v502_v34, %v503_v31  ;;  %784 = vmatpush1.bf16.msra.mxu1 %v1636_v36  ;;  %v1185_v34 = vld [vmem:[%s2077_s4 + $0x8] sm:$0xff] }
  0xc5   : > { %v509_v4 = vsel %vm505_vm9, %v497_v32, %v508_v37  ;;  %799 = vmatprep.subr.bf16.mxu1 %v1672_v14  ;;  %v1184_v32 = vld [vmem:[%s2077_s4] sm:$0xff] }
  0xc6   : > { %v1553_v15 = vcombine.high %v506_v1, %v509_v4  ;;  %v1552_v38 = vcombine.low %v506_v1, %v509_v4 }
  0xc8   : > { %756 = vmatprep.subr.bf16.mxu0 %v1553_v15 }
  0xc9   : > { %757 = vmatpush2.bf16.msra.mxu0 %v1552_v38 }
  0xcb   : > { %v1637_v40 = vld [vmem:[#allocation2 + $0xc8] ss:$12 sps:$4 sm:$0xff]  }
  0xcc   : > { %759 = vmatmul.mubr.bf16.vlgmr.msra.gmra.mxu0 %v1638_v39  ;;  %800 = vmatpush2.bf16.msra.mxu1 %v1637_v40 }
  0xcd   : > { %1395 = vmatprep.subr.bf16.mxu1 %v1672_v14  ;;  %v567_v48 = vpop.permute.xlu1 %566  ;;  %1590 = vmatprep.mubr.msk.bf16.mxu0 %vm722_vm0, %v1650_v33 }
  0xce   : > { %v562_v0 = vpop.permute.xlu0 %561 }
  0xcf   : > { %802 = vmatmul.mubr.bf16.vlgmr.msra.gmra.mxu1 %v1638_v39 }
  0xd0   : > { %1591 = vmatprep.mubr.msk.bf16.mxu1 %vm722_vm0, %v1650_v33 }
 0x18c   : > { %v760_v44 = vpop.f32.mrf.mxu0 }
 0x18d   : > { %v761_v46 = vadd.f32 %v760_v44, %v562_v0 }
 0x18e   : > { %v762_v49 = vpop.f32.mrf.mxu0 }
 0x18f   : > { %v810_v50 = vmax.f32 %v761_v46, 0.0  ;;  %v763_v51 = vadd.f32 %v762_v49, %v562_v0  ;;  %v803_v53 = vpop.f32.mrf.mxu1 }
 0x190   : > { %v764_v55 = vpop.f32.mrf.mxu0  ;;  %v804_v56 = vadd.f32 %v803_v53, %v562_v0 }
 0x191   : > { %v1892_v57 = vmul.f32 %v820_v47, %v810_v50  ;;  %v811_v58 = vmax.f32 %v763_v51, 0.0  ;;  %v765_v59 = vadd.f32 %v764_v55, %v567_v48  ;;  %v805_v60 = vpop.f32.mrf.mxu1 }
 0x192   : > { %v766_v61 = vpop.f32.mrf.mxu0  ;;  %v812_v62 = vmax.f32 %v804_v56, 0.0 }
 0x193   : > { %v1894_v63 = vmul.f32 %v824_v52, %v811_v58  ;;  %v813_v3 = vmax.f32 %v765_v59, 0.0  ;;  %v767_v5 = vadd.f32 %v766_v61, %v567_v48  ;;  %v806_v6 = vpop.f32.mrf.mxu1 }
 0x194   : > { %v807_v8 = vadd.f32 %v806_v6, %v567_v48  ;;  %v834_v9 = vmul.f32 %v828_v54, %v812_v62 }
 0x195   : > { %v1604_v7 = vpack.c.bf16 %v1894_v63, %v1892_v57  ;;  %v1898_v10 = vmul.f32 %v820_v47, %v813_v3  ;;  %v808_v11 = vpop.f32.mrf.mxu1  ;;  %v814_v12 = vmax.f32 %v767_v5, 0.0 }
 0x196   : > { %v815_v13 = vmax.f32 %v807_v8, 0.0  ;;  %v1605_v17 = vpack.c.bf16 %v834_v9, %v834_v9 }
 0x197   : > { %862 = vst [vmem:[#allocation3 + $0x4] sm:$0xff] %v1604_v7  ;;  %1086 = vrot.lane.b32.xlu1 %v1604_v7, %s1671_s27  ;;  %v1901_v18 = vmul.f32 %v824_v52, %v814_v12  ;;  %v1661_v22 = vpack.c.bf16 %v1898_v10, %v1892_v57 }
 0x198   : > { %v837_v19 = vmul.f32 %v828_v54, %v815_v13  ;;  %863 = vst [vmem:[#allocation3 + $0xc] sm:$0xf] %v1605_v17 }
 0x199   : > { %v1606_v20 = vpack.c.bf16 %v1901_v18, %v1898_v10  ;;  %v1662_v23 = vpack.c.bf16 %v1901_v18, %v1894_v63 }
 0x19a   : > { %v1607_v21 = vpack.c.bf16 %v837_v19, %v837_v19 }
 0x19b   : > { %1052 = vrot.lane.b32.xlu1 %v1604_v7, %s1673_s28  ;;  %864 = vst [vmem:[#allocation3 + $0x18] sm:$0xff] %v1606_v20 }
 0x19c   : > { %865 = vst [vmem:[#allocation3 + $0x20] sm:$0xf] %v1607_v21 }
 0x19e   : > { %v968_v26 = vld [vmem:[#allocation3] sm:$0xff] }
 0x19f   : > { %1018 = vrot.lane.b32.xlu1 %v1604_v7, %s1674_s29  ;;  %v1003_v24 = vld [vmem:[#allocation3 + $0xc] sm:$0xf] }
 0x1a0   : > { %v1079_v25 = vld [vmem:[#allocation3 + $0xc] sm:$0xff]  ;;  %1007 = vst [vmem:[#allocation2 + $0x68] sm:$0xf] %v1003_v24 }
 0x1a1   : > { %1088 = vrot.lane.b32.xlu0 %v1079_v25, %s1671_s27  ;;  %v969_v29 = vld [vmem:[#allocation3 + $0x8] sm:$0xff] }
 0x1a2   : > { %v970_v30 = vld [vmem:[#allocation3 + $0x14] sm:$0xff] }
 0x1a3   : > { %976 = vrot.lane.b32.xlu1 %v968_v26, %s1675_s30  ;;  %v1005_v27 = vld [vmem:[#allocation3 + $0x20] sm:$0xf] }
 0x1a4   : > { %1009 = vst [vmem:[#allocation2 + $0x74] sm:$0xf] %v1005_v27  ;;  %v1081_v28 = vld [vmem:[#allocation3 + $0x20] sm:$0xff] }
 0x1a5   : > { %1054 = vrot.lane.b32.xlu0 %v1079_v25, %s1673_s28  ;;  %v971_v31 = vld [vmem:[#allocation3 + $0x1c] sm:$0xff] }
 0x1a7   : > { %942 = vrot.lane.b32.xlu1 %v968_v26, %s1676_s7 }
 0x1a9   : > { %1020 = vrot.lane.b32.xlu0 %v1079_v25, %s1674_s29 }
 0x1ab   : > { %908 = vrot.lane.b32.xlu1 %v968_v26, %s1677_s8 }
 0x1ad   : > { %1092 = vrot.lane.b32.xlu0 %v1081_v28, %s1671_s27 }
 0x1af   : > { %874 = vrot.lane.b32.xlu1 %v968_v26, %s1678_s9 }
 0x1b1   : > { %1058 = vrot.lane.b32.xlu0 %v1081_v28, %s1673_s28 }
 0x1b3   : > { %1090 = vrot.lane.b32.xlu1 %v1606_v20, %s1671_s27 }
 0x1b5   : > { %1024 = vrot.lane.b32.xlu0 %v1081_v28, %s1674_s29 }
 0x1b7   : > { %1056 = vrot.lane.b32.xlu1 %v1606_v20, %s1673_s28 }
 0x1b9   : > { %978 = vrot.lane.b32.xlu0 %v969_v29, %s1675_s30 }
 0x1bb   : > { %1022 = vrot.lane.b32.xlu1 %v1606_v20, %s1674_s29 }
 0x1bd   : > { %944 = vrot.lane.b32.xlu0 %v969_v29, %s1676_s7 }
 0x1bf   : > { %1120 = vrot.lane.b32.xlu1 %v1604_v7, %s1679_s12 }
 0x1c1   : > { %910 = vrot.lane.b32.xlu0 %v969_v29, %s1677_s8 }
 0x1c3   : > { %980 = vrot.lane.b32.xlu1 %v970_v30, %s1675_s30 }
 0x1c5   : > { %876 = vrot.lane.b32.xlu0 %v969_v29, %s1678_s9 }
 0x1c7   : > { %946 = vrot.lane.b32.xlu1 %v970_v30, %s1676_s7 }
 0x1c9   : > { %1122 = vrot.lane.b32.xlu0 %v1079_v25, %s1679_s12 }
 0x1cb   : > { %912 = vrot.lane.b32.xlu1 %v970_v30, %s1677_s8 }
 0x1cd   : > { %982 = vrot.lane.b32.xlu0 %v971_v31, %s1675_s30 }
 0x1cf   : > { %878 = vrot.lane.b32.xlu1 %v970_v30, %s1678_s9 }
 0x1d1   : > { %948 = vrot.lane.b32.xlu0 %v971_v31, %s1676_s7 }
 0x1d3   : > { %1124 = vrot.lane.b32.xlu1 %v1606_v20, %s1679_s12 }
 0x1d5   : > { %914 = vrot.lane.b32.xlu0 %v971_v31, %s1677_s8  ;;  %s1609_s8 = smul.u32 48, %s2081_s22 }
 0x1d7   : > { %1188 = vperm.xlu1 %1628, %v1184_v32   ;;  %s2057_s11 = scalar_lea.vmem %s2079_s6, %s1609_s8 }
 0x1d9   : > { %880 = vrot.lane.b32.xlu0 %v971_v31, %s1678_s9 }
 0x1dd   : > { %1126 = vrot.lane.b32.xlu0 %v1081_v28, %s1679_s12 }
 0x1e1   : > { %1193 = vperm.xlu0 %1627, %v1185_v34  }
 0x209   : > { %v1087_v35 = vpop.permute.xlu1 %1086 }
 0x20a   : > { %v1094_v15 = vrot.slane %v1087_v35, 4 }
 0x20d   : > { %v1053_v36 = vpop.permute.xlu1 %1052 }
 0x20e   : > { %v1060_v0 = vrot.slane %v1053_v36, 4 }
 0x211   : > { %v1019_v37 = vpop.permute.xlu1 %1018 }
 0x212   : > { %v1026_v48 = vrot.slane %v1019_v37, 4 }
 0x213   : > { %v1089_v1 = vpop.permute.xlu0 %1088 }
 0x214   : > { %v1095_v4 = vrot.slane %v1089_v1, 4 }
 0x215   : > { %v977_v38 = vpop.permute.xlu1 %976 }
 0x216   : > { %v1100_v39 = vsel %vm478_vm2, %v1089_v1, %v1095_v4  ;;  %v1098_v40 = vsel %vm297_vm1, %v1094_v15, %v1095_v4  ;;  %v984_v20 = vrot.slane %v977_v38, 4 }
 0x217   : > { %1109 = vst [vmem:[#allocation2 + $0xb0] sm:$0xf] %v1100_v39  ;;  %v1055_v41 = vpop.permute.xlu0 %1054  ;;  %v1099_v42 = vsel %vm478_vm2, %v1087_v35, %v1098_v40 }
 0x218   : > { %v1061_v43 = vrot.slane %v1055_v41, 4 }
 0x219   : > { %v1954_v2 = vpop.permute.xlu1 %942 }
 0x21a   : > { %v1066_v16 = vsel %vm451_vm3, %v1055_v41, %v1061_v43  ;;  %v1064_v44 = vsel %vm297_vm1, %v1060_v0, %v1061_v43  ;;  %v950_v35 = vrot.slane %v1954_v2, 4 }
 0x21b   : > { %1075 = vst [vmem:[#allocation2 + $0x98] sm:$0xf] %v1066_v16  ;;  %v1021_v45 = vpop.permute.xlu0 %1020  ;;  %v1065_v46 = vsel %vm451_vm3, %v1053_v36, %v1064_v44 }
 0x21c   : > { %v1027_v47 = vrot.slane %v1021_v45, 4 }
 0x21d   : > { %v1959_v49 = vpop.permute.xlu1 %908 }
 0x21e   : > { %v1032_v50 = vsel %vm424_vm4, %v1021_v45, %v1027_v47  ;;  %v1030_v51 = vsel %vm297_vm1, %v1026_v48, %v1027_v47  ;;  %v916_v0 = vrot.slane %v1959_v49, 4  ;;  %v1644_v47 = vld [vmem:[#allocation2 + $0x68] ss:$12 sps:$4 sm:$0xff]  }
 0x21f   : > { %1041 = vst [vmem:[#allocation2 + $0x80] sm:$0xf] %v1032_v50  ;;  %v1093_v52 = vpop.permute.xlu0 %1092  ;;  %v1964_v53 = vsel %vm424_vm4, %v1019_v37, %v1030_v51 }
 0x220   : > { %v1097_v54 = vrot.slane %v1093_v52, 4 }
 0x221   : > { %v1966_v55 = vpop.permute.xlu1 %874 }
 0x222   : > { %v1103_v56 = vsel %vm478_vm2, %v1093_v52, %v1097_v54  ;;  %v882_v50 = vrot.slane %v1966_v55, 4 }
 0x223   : > { %1111 = vst [vmem:[#allocation2 + $0xbc] sm:$0xf] %v1103_v56  ;;  %v1059_v58 = vpop.permute.xlu0 %1058 }
 0x224   : > { %v1063_v59 = vrot.slane %v1059_v58, 4 }
 0x225   : > { %v1091_v60 = vpop.permute.xlu1 %1090 }
 0x226   : > { %v1069_v61 = vsel %vm451_vm3, %v1059_v58, %v1063_v59  ;;  %v1096_v62 = vrot.slane %v1091_v60, 4 }
 0x227   : > { %1077 = vst [vmem:[#allocation2 + $0xa4] sm:$0xf] %v1069_v61  ;;  %v1025_v3 = vpop.permute.xlu0 %1024 }
 0x228   : > { %v1029_v5 = vrot.slane %v1025_v3, 4  ;;  %v1101_v6 = vsel %vm297_vm1, %v1096_v62, %v1097_v54 }
 0x229   : > { %v1102_v7 = vsel %vm478_vm2, %v1091_v60, %v1101_v6  ;;  %v1057_v8 = vpop.permute.xlu1 %1056 }
 0x22a   : > { %v1035_v9 = vsel %vm424_vm4, %v1025_v3, %v1029_v5  ;;  %v1641_v11 = vld [vmem:[#allocation2 + $0xb0] ss:$12 sps:$4 sm:$0xff]   ;;  %v1062_v12 = vrot.slane %v1057_v8, 4  ;;  %v1584_v13 = vcombine.low %v1099_v42, %v1102_v7  ;;  %v1585_v17 = vcombine.high %v1099_v42, %v1102_v7 }
 0x22b   : > { %1043 = vst [vmem:[#allocation2 + $0x8c] sm:$0xf] %v1035_v9  ;;  %v979_v19 = vpop.permute.xlu0 %978  ;;  %1396 = vmatpush1.bf16.msra.mxu1 %v1641_v11 }
 0x22c   : > { %v985_v21 = vrot.slane %v979_v19, 4  ;;  %v1067_v24 = vsel %vm297_vm1, %v1062_v12, %v1063_v59  ;;  %1352 = vmatprep.subr.bf16.mxu0 %v1585_v17  ;;  %1397 = vmatprep.subr.bf16.mxu1 %v1672_v14 }
 0x22d   : > { %v1068_v25 = vsel %vm451_vm3, %v1057_v8, %v1067_v24  ;;  %v1023_v26 = vpop.permute.xlu1 %1022  ;;  %1353 = vmatpush1.bf16.msra.mxu0 %v1584_v13 }
 0x22e   : > { %v988_v27 = vsel %vm297_vm1, %v984_v20, %v985_v21  ;;  %v990_v28 = vsel %vm380_vm5, %v979_v19, %v985_v21  ;;  %v1642_v29 = vld [vmem:[#allocation2 + $0x98] ss:$12 sps:$4 sm:$0xff]   ;;  %v1028_v30 = vrot.slane %v1023_v26, 4  ;;  %v1581_v31 = vcombine.low %v1065_v46, %v1068_v25 }
 0x22f   : > { %v1979_v32 = vsel %vm380_vm5, %v977_v38, %v988_v27  ;;  %999 = vst [vmem:[#allocation2 + $0x50] sm:$0xf] %v990_v28  ;;  %v945_v33 = vpop.permute.xlu0 %944  ;;  %v1582_v34 = vcombine.high %v1065_v46, %v1068_v25  ;;  %1398 = vmatpush1.bf16.msra.mxu1 %v1642_v29 }
 0x230   : > { %v951_v36 = vrot.slane %v945_v33, 4  ;;  %v1033_v37 = vsel %vm297_vm1, %v1028_v30, %v1029_v5  ;;  %1399 = vmatprep.subr.bf16.mxu1 %v1672_v14 }
 0x231   : > { %v1034_v1 = vsel %vm424_vm4, %v1023_v26, %v1033_v37  ;;  %v1121_v4 = vpop.permute.xlu1 %1120  ;;  %1354 = vmatprep.subr.bf16.mxu0 %v1582_v34 }
 0x232   : > { %v954_v15 = vsel %vm297_vm1, %v950_v35, %v951_v36  ;;  %v956_v38 = vsel %vm353_vm6, %v945_v33, %v951_v36  ;;  %v1643_v39 = vld [vmem:[#allocation2 + $0x80] ss:$12 sps:$4 sm:$0xff]   ;;  %1355 = vmatpush1.bf16.msra.mxu0 %v1581_v31  ;;  %v1578_v40 = vcombine.low %v1964_v53, %v1034_v1  ;;  %v1579_v43 = vcombine.high %v1964_v53, %v1034_v1 }
 0x233   : > { %v1990_v41 = vsel %vm353_vm6, %v1954_v2, %v954_v15  ;;  %965 = vst [vmem:[#allocation2 + $0x38] sm:$0xf] %v956_v38  ;;  %v911_v42 = vpop.permute.xlu0 %910  ;;  %1400 = vmatpush1.bf16.msra.mxu1 %v1643_v39  ;;  %v1128_v54 = vrot.slane %v1121_v4, 4 }
 0x234   : > { %v917_v16 = vrot.slane %v911_v42, 4  ;;  %1401 = vmatprep.subr.bf16.mxu1 %v1672_v14  ;;  %1356 = vmatprep.subr.bf16.mxu0 %v1579_v43 }
 0x235   : > { %v981_v44 = vpop.permute.xlu1 %980 }
 0x236   : > { %v920_v45 = vsel %vm297_vm1, %v916_v0, %v917_v16  ;;  %v922_v46 = vsel %vm326_vm7, %v911_v42, %v917_v16  ;;  %1357 = vmatpush1.bf16.msra.mxu0 %v1578_v40  ;;  %v986_v10 = vrot.slane %v981_v44, 4 }
 0x237   : > { %v1999_v2 = vsel %vm326_vm7, %v1959_v49, %v920_v45  ;;  %931 = vst [vmem:[#allocation2 + $0x20] sm:$0xf] %v922_v46  ;;  %v877_v48 = vpop.permute.xlu0 %876  ;;  %1358 = vmatprep.subr.bf16.mxu0 %v1662_v23  ;;  %1402 = vmatpush1.bf16.msra.mxu1 %v1644_v47  ;;  %v1652_v46 = vld [vmem:[%s2076_s3] ss:$8 sps:$4 sm:$0xff]  }
 0x238   : > { %v883_v51 = vrot.slane %v877_v48, 4  ;;  %1403 = vmatprep.subr.bf16.mxu1 %v1672_v14 }
 0x239   : > { %v947_v18 = vpop.permute.xlu1 %946 }
 0x23a   : > { %v886_v52 = vsel %vm297_vm1, %v882_v50, %v883_v51  ;;  %v888_v53 = vsel %vm299_vm8, %v877_v48, %v883_v51  ;;  %1359 = vmatpush1.bf16.msra.mxu0 %v1661_v22  ;;  %v952_v6 = vrot.slane %v947_v18, 4 }
 0x23b   : > { %v2013_v49 = vsel %vm299_vm8, %v1966_v55, %v886_v52  ;;  %897 = vst [vmem:[#allocation2 + $0x8] sm:$0xf] %v888_v53  ;;  %v1123_v63 = vpop.permute.xlu0 %1122  ;;  %v1653_v52 = vld [vmem:[%s1729_s26 + $0x8] sm:$0xff] }
 0x23c   : > { %v1129_v23 = vrot.slane %v1123_v63, 4 }
 0x23d   : > { %v913_v22 = vpop.permute.xlu1 %912 }
 0x23e   : > { %v1134_v56 = vsel %vm505_vm9, %v1123_v63, %v1129_v23  ;;  %v1132_v58 = vsel %vm297_vm1, %v1128_v54, %v1129_v23  ;;  %v918_v20 = vrot.slane %v913_v22, 4  ;;  %v1654_v54 = vld [vmem:[%s1729_s26 + $0x10] sm:$0xff] }
 0x23f   : > { %1143 = vst [vmem:[#allocation2 + $0xc8] sm:$0xf] %v1134_v56  ;;  %v983_v59 = vpop.permute.xlu0 %982  ;;  %v2018_v60 = vsel %vm505_vm9, %v1121_v4, %v1132_v58 }
 0x240   : > { %v987_v57 = vrot.slane %v983_v59, 4 }
 0x241   : > { %v879_v17 = vpop.permute.xlu1 %878 }
 0x242   : > { %v993_v55 = vsel %vm380_vm5, %v983_v59, %v987_v57  ;;  %v991_v61 = vsel %vm297_vm1, %v986_v10, %v987_v57  ;;  %v884_v31 = vrot.slane %v879_v17, 4 }
 0x243   : > { %1001 = vst [vmem:[#allocation2 + $0x5c] sm:$0xf] %v993_v55  ;;  %v949_v62 = vpop.permute.xlu0 %948  ;;  %v992_v3 = vsel %vm380_vm5, %v981_v44, %v991_v61 }
 0x244   : > { %v953_v5 = vrot.slane %v949_v62, 4  ;;  %v1572_v7 = vcombine.low %v1979_v32, %v992_v3  ;;  %v1573_v8 = vcombine.high %v1979_v32, %v992_v3 }
 0x245   : > { %v1125_v34 = vpop.permute.xlu1 %1124 }
 0x246   : > { %v959_v9 = vsel %vm353_vm6, %v949_v62, %v953_v5  ;;  %v957_v11 = vsel %vm297_vm1, %v952_v6, %v953_v5  ;;  %1360 = vmatprep.subr.bf16.mxu0 %v1573_v8  ;;  %v1130_v38 = vrot.slane %v1125_v34, 4  ;;  %v1656_v62 = vld [vmem:[%s1729_s26 + $0x18] sm:$0xff] }
 0x247   : > { %967 = vst [vmem:[#allocation2 + $0x44] sm:$0xf] %v959_v9  ;;  %v915_v12 = vpop.permute.xlu0 %914  ;;  %v958_v13 = vsel %vm353_vm6, %v947_v18, %v957_v11  ;;  %1361 = vmatpush1.bf16.msra.mxu0 %v1572_v7  ;;  %v1657_v7 = vld [vmem:[%s1729_s26 + $0x38] sm:$0xff] }
 0x248   : > { %v919_v19 = vrot.slane %v915_v12, 4  ;;  %v1569_v21 = vcombine.low %v1990_v41, %v958_v13  ;;  %v1570_v24 = vcombine.high %v1990_v41, %v958_v13 }
 0x24a   : > { %v925_v25 = vsel %vm326_vm7, %v915_v12, %v919_v19  ;;  %v923_v26 = vsel %vm297_vm1, %v918_v20, %v919_v19  ;;  %v1645_v27 = vld [vmem:[#allocation2 + $0x50] ss:$12 sps:$4 sm:$0xff]   ;;  %1362 = vmatprep.subr.bf16.mxu0 %v1570_v24 }
 0x24b   : > { %933 = vst [vmem:[#allocation2 + $0x2c] sm:$0xf] %v925_v25  ;;  %v881_v28 = vpop.permute.xlu0 %880  ;;  %v924_v29 = vsel %vm326_vm7, %v913_v22, %v923_v26  ;;  %1363 = vmatpush1.bf16.msra.mxu0 %v1569_v21  ;;  %1404 = vmatpush1.bf16.msra.mxu1 %v1645_v27  ;;  %v1655_v22 = vld [vmem:[%s1729_s26 + $0x30] sm:$0xff] }
 0x24c   : > { %v885_v30 = vrot.slane %v881_v28, 4  ;;  %v1566_v32 = vcombine.low %v1999_v2, %v924_v29  ;;  %v1567_v33 = vcombine.high %v1999_v2, %v924_v29  ;;  %1405 = vmatprep.subr.bf16.mxu1 %v1672_v14 }
 0x24e   : > { %v891_v35 = vsel %vm299_vm8, %v881_v28, %v885_v30  ;;  %v889_v36 = vsel %vm297_vm1, %v884_v31, %v885_v30  ;;  %v1646_v37 = vld [vmem:[#allocation2 + $0x38] ss:$12 sps:$4 sm:$0xff]   ;;  %1364 = vmatprep.subr.bf16.mxu0 %v1567_v33 }
 0x24f   : > { %899 = vst [vmem:[#allocation2 + $0x14] sm:$0xf] %v891_v35  ;;  %v1127_v1 = vpop.permute.xlu0 %1126  ;;  %v890_v4 = vsel %vm299_vm8, %v879_v17, %v889_v36  ;;  %1365 = vmatpush1.bf16.msra.mxu0 %v1566_v32  ;;  %1406 = vmatpush1.bf16.msra.mxu1 %v1646_v37  ;;  %v1658_v17 = vld [vmem:[%s1729_s26 + $0x40] sm:$0xff] }
 0x250   : > { %v1131_v15 = vrot.slane %v1127_v1, 4  ;;  %v1563_v39 = vcombine.low %v2013_v49, %v890_v4  ;;  %v1564_v40 = vcombine.high %v2013_v49, %v890_v4  ;;  %1407 = vmatprep.subr.bf16.mxu1 %v1672_v14 }
 0x252   : > { %v1137_v41 = vsel %vm505_vm9, %v1127_v1, %v1131_v15  ;;  %v1135_v42 = vsel %vm297_vm1, %v1130_v38, %v1131_v15  ;;  %v1647_v43 = vld [vmem:[#allocation2 + $0x20] ss:$12 sps:$4 sm:$0xff]   ;;  %1366 = vmatprep.subr.bf16.mxu0 %v1564_v40  ;;  %v1189_v2 = vpop.permute.xlu1 %1188 }
 0x253   : > { %1145 = vst [vmem:[#allocation2 + $0xd4] sm:$0xf] %v1137_v41  ;;  %v1136_v0 = vsel %vm505_vm9, %v1125_v34, %v1135_v42  ;;  %1367 = vmatpush1.bf16.msra.mxu0 %v1563_v39  ;;  %1408 = vmatpush1.bf16.msra.mxu1 %v1647_v43 }
 0x254   : > { %v1587_v16 = vcombine.low %v2018_v60, %v1136_v0  ;;  %v1588_v44 = vcombine.high %v2018_v60, %v1136_v0  ;;  %1409 = vmatprep.subr.bf16.mxu1 %v1672_v14 }
 0x256   : > { %v1648_v45 = vld [vmem:[#allocation2 + $0x8] ss:$12 sps:$4 sm:$0xff]   ;;  %1382 = vmatprep.subr.bf16.mxu0 %v1588_v44 }
 0x257   : > { %1383 = vmatpush2.bf16.msra.mxu0 %v1587_v16  ;;  %1410 = vmatpush1.bf16.msra.mxu1 %v1648_v45 }
 0x258   : > { %1425 = vmatprep.subr.bf16.mxu1 %v1672_v14 }
 0x25a   : > { %v1649_v47 = vld [vmem:[#allocation2 + $0xc8] ss:$12 sps:$4 sm:$0xff]   ;;  %1385 = vmatmul.mubr.bf16.vlgmr.msra.gmra.mxu0 %v1652_v46 }
 0x25b   : > { %1426 = vmatpush2.bf16.msra.mxu1 %v1649_v47 }
 0x25c   : > { %v1194_v63 = vpop.permute.xlu0 %1193 }
 0x25e   : > { %1428 = vmatmul.mubr.bf16.vlgmr.msra.gmra.mxu1 %v1652_v46 }
 0x31a   : > { %v1386_v48 = vpop.f32.mrf.mxu0 }
 0x31b   : > { %v1387_v50 = vadd.f32 %v1386_v48, %v1189_v2 }
 0x31c   : > { %v1388_v51 = vpop.f32.mrf.mxu0 }
 0x31d   : > { %v1436_v53 = vadd.f32 %v1653_v52, %v1387_v50  ;;  %v1389_v49 = vadd.f32 %v1388_v51, %v1189_v2 }
 0x31e   : > { %v1390_v14 = vpop.f32.mrf.mxu0  ;;  %v1429_v18 = vpop.f32.mrf.mxu1 }
 0x31f   : > { %v1442_v23 = vmax.f32 %v1436_v53, 0.0  ;;  %v1437_v56 = vadd.f32 %v1654_v54, %v1389_v49  ;;  %v1391_v58 = vadd.f32 %v1390_v14, %v1194_v63  ;;  %v1430_v59 = vadd.f32 %v1429_v18, %v1189_v2 }
 0x320   : > { %v1392_v60 = vpop.f32.mrf.mxu0  ;;  %v1431_v57 = vpop.f32.mrf.mxu1 }
 0x321   : > { %1448 = vst [vmem:[%s2057_s11] sm:$0xff] %v1442_v23  ;;  %v1443_v10 = vmax.f32 %v1437_v56, 0.0  ;;  %v1439_v55 = vadd.f32 %v1655_v22, %v1391_v58  ;;  %v1393_v61 = vadd.f32 %v1392_v60, %v1194_v63  ;;  %v1438_v3 = vadd.f32 %v1656_v62, %v1430_v59 }
 0x322   : > { %v1432_v5 = vpop.f32.mrf.mxu1 }
 0x323   : > { %1449 = vst [vmem:[%s2057_s11 + $0x8] sm:$0xff] %v1443_v10  ;;  %v1445_v6 = vmax.f32 %v1439_v55, 0.0  ;;  %v1440_v8 = vadd.f32 %v1657_v7, %v1393_v61  ;;  %v1444_v9 = vmax.f32 %v1438_v3, 0.0  ;;  %v1433_v11 = vadd.f32 %v1432_v5, %v1194_v63 }
 0x324   : > { %v1434_v12 = vpop.f32.mrf.mxu1 }
 0x325   : > { %1451 = vst [vmem:[%s2057_s11 + $0x18] sm:$0xff] %v1445_v6  ;;  %v1446_v13 = vmax.f32 %v1440_v8, 0.0  ;;  %1450 = vst [vmem:[%s2057_s11 + $0x10] sm:$0xff] %v1444_v9  ;;  %v1441_v19 = vadd.f32 %v1658_v17, %v1433_v11 }
 0x327   : > { %1452 = vst [vmem:[%s2057_s11 + $0x20] sm:$0xff] %v1446_v13  ;;  %v1447_v20 = vmax.f32 %v1441_v19, 0.0 }
 0x329   : > { %1453 = vst [vmem:[%s2057_s11 + $0x28] sm:$0xff] %v1447_v20 }
 0x32a PF: > { %s16_s21 = sadd.s32 1, %s1669_s21  }
 0x32b   : > { %p13_p4 = scmp.ge.s32.totalorder %s16_s21, 4  }
 0x32d   :  { %15 = sbr.rel (!%p13_p4) target bundleno = 1 (0x1), region = 74 }

</bundles_post_ra>
